<compile_context>
chip_gen: v6e
topology: v6e:2x2x1
jax: 0.10.0
libtpu: 0.0.40
codegen_flags: <defaults>
</compile_context>

<pallas_src>
import functools
import math

import jax
import jax.numpy as jnp
from jax.experimental import pallas as pl
from jax.experimental.pallas import tpu as pltpu


_LANE = 128
_SUBLANE = 8
_BLOCK_BUDGET_BYTES = 8 * 1024 * 1024    # per input block (Pallas double-buffers it)
_VMEM_LIMIT_BYTES = 32 * 1024 * 1024     # raises v5e's 16 MiB default, == v7x scoped default


def _pick_tile(n, target, align):
    """Largest t <= target with n % t == 0 and (t % align == 0 or t == n)."""
    if n <= target or n <= align:
        return n
    t = (min(target, n) // align) * align
    while t >= align:
        if n % t == 0:
            return t
        t -= align
    # No aligned divisor: the full dim is always a legal block shape.
    # TODO(synk): masked ragged-edge tiling for pathological (prime-ish) extents.
    return n


def _choose_tiles(bc, hw, itemsize, row_cap, hw_cap, block_budget):
    # Spatial (lane-contiguous) tile first: as large as the per-block budget allows
    # (assuming a minimal 8-row tile), preferring the full HW extent.
    hw_target = min(hw_cap, max(_LANE, block_budget // (_SUBLANE * itemsize)))
    t_hw = _pick_tile(hw, hw_target, _LANE)
    # Row tile: fill the remaining per-block budget.  Keep >= 2 row tiles whenever
    # BC allows so the "parallel" grid axis can feed both TensorCores on v7x.
    row_budget = max(_SUBLANE, block_budget // max(1, t_hw * itemsize))
    row_target = min(row_cap, row_budget)
    if bc >= 2 * _SUBLANE:
        row_target = min(row_target, bc // 2)
    t_row = _pick_tile(bc, max(_SUBLANE, row_target), _SUBLANE)
    return t_row, t_hw


def _pool_mean_acc_kernel(x_ref, o_ref, acc_ref, *, inv_hw):
    """Multi-step spatial reduction.  t_hw is always a multiple of 128 here.
    x_ref: (t_row, t_hw) native dtype; o_ref: (t_row, 1) f32; acc_ref: (t_row, 128) f32."""
    t_row, t_hw = x_ref.shape
    n_chunks = t_hw // _LANE

    @pl.when(pl.program_id(1) == 0)
    def _init():
        acc_ref[...] = jnp.zeros_like(acc_ref)

    # Lane-wide VPU accumulation in f32; a few independent partial accumulators
    # give the VALU enough ILP that the convert+add chain does not serialize at
    # v7x HBM bandwidth (neutral on v5e/v6e).
    n_parts = min(4, n_chunks)
    parts = [jnp.zeros((t_row, _LANE), jnp.float32) for _ in range(n_parts)]
    for c in range(n_chunks):
        chunk = x_ref[:, c * _LANE:(c + 1) * _LANE].astype(jnp.float32)
        parts[c % n_parts] = parts[c % n_parts] + chunk
    total = parts[0]
    for p in parts[1:]:
        total = total + p
    acc_ref[...] = acc_ref[...] + total

    @pl.when(pl.program_id(1) == pl.num_programs(1) - 1)
    def _finalize():
        # One 128->1 cross-lane (XLU) reduce per row tile + a single scale.
        o_ref[...] = jnp.sum(acc_ref[...], axis=-1, keepdims=True) * inv_hw


def _pool_mean_single_kernel(x_ref, o_ref, *, inv_hw):
    """Whole spatial extent in one block: reduce directly, no scratch round-trip."""
    o_ref[...] = jnp.sum(x_ref[...].astype(jnp.float32), axis=-1, keepdims=True) * inv_hw


def _eca_gate_kernel(w_ref, ypad_ref, o_ref, *, k_size):
    """k-tap channel conv (cross-correlation, zero padding already applied wrapper-side)
    followed by sigmoid.  w_ref: (k,) f32 in SMEM; ypad_ref: (B, C+2*pad) f32;
    o_ref: (B, C) in the input dtype.  k shifted FMAs -> no C x C temporaries."""
    _, C = o_ref.shape
    y_pad = ypad_ref[...]
    out = w_ref[0] * jax.lax.slice_in_dim(y_pad, 0, C, axis=1)
    for j in range(1, k_size):  # k_size is tiny & static
        out = out + w_ref[j] * jax.lax.slice_in_dim(y_pad, j, j + C, axis=1)
    o_ref[...] = jax.nn.sigmoid(out).astype(o_ref.dtype)


def eca_forward(x, w, k_size, *, row_tile=1024, hw_tile=8192,
                block_budget_bytes=_BLOCK_BUDGET_BYTES):
    """x: (B, C, H, W) (f32/bf16), w: (k_size,) Conv1d weight.
    Returns sigmoid(conv1d(avgpool(x))) with shape (B, C, 1, 1) in x.dtype
    (eca_layer.forward returns the gate, not x * gate)."""
    B, C, H, W = x.shape
    HW = H * W
    BC = B * C
    pad = k_size // 2

    # Stream x in its native dtype (bf16 stays bf16 -> half the HBM traffic);
    # all accumulation happens in f32 inside the kernel.
    x2 = x.reshape(BC, HW)
    itemsize = x2.dtype.itemsize
    t_row, t_hw = _choose_tiles(BC, HW, itemsize, row_tile, hw_tile, block_budget_bytes)
    grid = (BC // t_row, HW // t_hw)

    block_bytes = t_row * t_hw * itemsize
    vmem_limit = min(max(_VMEM_LIMIT_BYTES, int(2.5 * block_bytes) + (2 << 20)), 96 << 20)
    # Advisory: the only cost that matters is reading x once.
    cost = pl.CostEstimate(flops=BC * HW, transcendentals=0,
                           bytes_accessed=x2.size * itemsize + BC * 4)

    if grid[1] == 1:
        pooled = pl.pallas_call(
            functools.partial(_pool_mean_single_kernel, inv_hw=1.0 / HW),
            out_shape=jax.ShapeDtypeStruct((BC, 1), jnp.float32),
            grid=(grid[0],),
            in_specs=[pl.BlockSpec((t_row, t_hw), lambda r: (r, 0))],
            out_specs=pl.BlockSpec((t_row, 1), lambda r: (r, 0)),
            compiler_params=pltpu.CompilerParams(
                dimension_semantics=("parallel",),
                vmem_limit_bytes=vmem_limit),
            cost_estimate=cost,
        )(x2)
    else:
        pooled = pl.pallas_call(
            functools.partial(_pool_mean_acc_kernel, inv_hw=1.0 / HW),
            out_shape=jax.ShapeDtypeStruct((BC, 1), jnp.float32),
            grid=grid,
            in_specs=[pl.BlockSpec((t_row, t_hw), lambda r, h: (r, h))],
            out_specs=pl.BlockSpec((t_row, 1), lambda r, h: (r, 0)),
            scratch_shapes=[pltpu.VMEM((t_row, _LANE), jnp.float32)],
            compiler_params=pltpu.CompilerParams(
                dimension_semantics=("parallel", "arbitrary"),
                vmem_limit_bytes=vmem_limit),
            cost_estimate=cost,
        )(x2)

    # --- tiny gate kernel: zero-pad the (B, C) means once wrapper-side (negligible),
    # then k shifted FMAs + sigmoid inside the kernel ---
    y_pad = jnp.pad(pooled.reshape(B, C), ((0, 0), (pad, pad)))
    gate = pl.pallas_call(
        functools.partial(_eca_gate_kernel, k_size=k_size),
        out_shape=jax.ShapeDtypeStruct((B, C), x.dtype),
        grid=(1,),
        in_specs=[
            pl.BlockSpec(memory_space=pltpu.MemorySpace.SMEM),       # conv weights (k,)
            pl.BlockSpec((B, C + 2 * pad), lambda i: (0, 0)),
        ],
        out_specs=pl.BlockSpec((B, C), lambda i: (0, 0)),
        compiler_params=pltpu.CompilerParams(dimension_semantics=("arbitrary",)),
    )(w.astype(jnp.float32), y_pad)

    return gate.reshape(B, C, 1, 1)


if __name__ == "__main__":
    key = jax.random.PRNGKey(0)
    B, C, H, W = 2, 16, 16, 16

    # k_size derived exactly as in the module __init__ (channel=16 -> k_size=3).
    gamma, b_const = 2, 1
    t = int(abs((math.log(C, 2) + b_const) / gamma))
    k_size = t if t % 2 else t + 1
    pad = k_size // 2

    kx, kw = jax.random.split(key)
    x = jax.random.normal(kx, (B, C, H, W), dtype=jnp.float32)
    # Deterministic synthetic Conv1d(1, 1, k_size, bias=False) weight.
    w = jax.random.normal(kw, (k_size,), dtype=jnp.float32) * 0.5

    # Pure-JAX reference.
    y_mean = jnp.mean(x.astype(jnp.float32), axis=(2, 3))               # (B, C)
    y_padded = jnp.pad(y_mean, ((0, 0), (pad, pad)))
    conv = sum(w[j] * y_padded[:, j:j + C] for j in range(k_size))
    ref = jax.nn.sigmoid(conv).reshape(B, C, 1, 1)

    # 1) Default tiling -> single-spatial-step specialized path (grid = (2, 1)).
    out1 = jax.block_until_ready(eca_forward(x, w, k_size))
    assert out1.shape == (B, C, 1, 1) and out1.dtype == x.dtype
    assert jnp.allclose(out1, ref, atol=1e-5, rtol=1e-5)

    # 2) Small forced tiles -> multi-step accumulate/finalize path (grid = (4, 2)).
    out2 = jax.block_until_ready(eca_forward(x, w, k_size, row_tile=8, hw_tile=128))
    assert jnp.allclose(out2, ref, atol=1e-5, rtol=1e-5)

    # 3) bf16 input: native-dtype streaming, f32 accumulation, bf16 gate out.
    xb = x.astype(jnp.bfloat16)
    out3 = jax.block_until_ready(eca_forward(xb, w, k_size))
    assert out3.dtype == jnp.bfloat16
    assert jnp.allclose(out3.astype(jnp.float32), ref, atol=2e-2, rtol=2e-2)

    print("KERNEL_OK")
</pallas_src>

<mosaic_0001>
module attributes {stable_mosaic.version = 11 : i64} {
  func.func @_pool_mean_single_kernel(%arg0: i32, %arg1: memref<16x256xf32, #tpu.memory_space<vmem>>, %arg2: memref<16x1xf32, #tpu.memory_space<vmem>>) attributes {dimension_semantics = [#tpu.dimension_semantics<parallel>], iteration_bounds = array<i64: 2>, scalar_prefetch = 0 : i64, scratch_operands = 0 : i64, tpu.core_type = #tpu.core_type<tc>, window_params = [{transform_indices = @transform_0, window_bounds = array<i64: 16, 256>}, {transform_indices = @transform_1, window_bounds = array<i64: 16, 1>}]} {
    %c0 = arith.constant 0 : index
    %c0_0 = arith.constant 0 : index
    %0 = vector.load %arg1[%c0, %c0_0] : memref<16x256xf32, #tpu.memory_space<vmem>>, vector<16x256xf32>
    %cst = arith.constant dense<0.000000e+00> : vector<16xf32>
    %1 = vector.multi_reduction <add>, %0, %cst [1] : vector<16x256xf32> to vector<16xf32>
    %2 = vector.shape_cast %1 : vector<16xf32> to vector<16x1xf32>
    %cst_1 = arith.constant 3.906250e-03 : f32
    %3 = vector.broadcast %cst_1 : f32 to vector<16x1xf32>
    %4 = arith.mulf %2, %3 : vector<16x1xf32>
    %c0_2 = arith.constant 0 : index
    %c0_3 = arith.constant 0 : index
    %5 = vector.load %arg2[%c0_2, %c0_3] : memref<16x1xf32, #tpu.memory_space<vmem>>, vector<16x1xf32>
    tpu.vector_store %arg2[%c0_2, %c0_3], %4 {strides = array<i32>} : memref<16x1xf32, #tpu.memory_space<vmem>>, vector<16x1xf32>,
    return
  }
  func.func @transform_0(%arg0: i32) -> (i32, i32) {
    %c0_i32 = arith.constant 0 : i32
    %c0_i32_0 = arith.constant 0 : i32
    return %arg0, %c0_i32 : i32, i32
  }
  func.func @transform_1(%arg0: i32) -> (i32, i32) {
    %c0_i32 = arith.constant 0 : i32
    %c0_i32_0 = arith.constant 0 : i32
    return %arg0, %c0_i32 : i32, i32
  }
}

</mosaic_0001>

<bundles_post_ra>
// kernel: tpu_custom_call.1
= control target key start
LH: loop header
LB: loop body
LE: loop exit
PB: predicated region body
PF: predicated region fallthrough
CT: control target
= control target key end

     0   :  { %6 = vsyncpa [#allocation3], 0  ;;  %s456_s0 = inlined_call_operand.hbm [shape: f32[32,256], index: 0, kind: input, shape index: {}]   ;;  %s457_s1 = inlined_call_operand.vmem [shape: f32[32,1], index: 1, kind: output, shape index: {}]  }
   0x1   :  { %8 = vsyncpa [#allocation3 + $0x1], 0  ;;  %s356_s6 = smov 0   ;;  %s358_s7 = smov 0  }
   0x2   :  { %s360_s8 = smov 0   ;;  %s362_s9 = smov 0  }
   0x3 LB: > { %s222_s10 = sadd.s32 4294967295, %s341_s9   ;;  %s376_s11 = sadd.s32 1, %s341_s9   ;;  %s341_s9 = sphi %s362_s9, %s466_s9   ;;  %s337_s8 = sphi %s360_s8, %s465_s8   ;;  %s333_s7 = sphi %s358_s7, %s464_s7   ;;  %s329_s6 = sphi %s356_s6, %s463_s6  }
   0x4   : > { %s18_s12 = ssub.s32 %s341_s9, %s376_s11  ;;  %s21_s13 = sadd.s32 1, %s337_s8 }
   0x5   : > { %p19_p0 = scmp.eq.s32.totalorder %s18_s12, 0  ;;  %p28_p1 = scmp.ne.s32.totalorder %s337_s8, %s333_s7 }
   0x6   : > { %p29_p2 = scmp.eq.s32.totalorder %s341_s9, 0  ;;  %p34_p3 = scmp.ne.s32.totalorder %s333_s7, %s329_s6 }
   0x7   : > { %s386_s14 = scalar_select %p19_p0, %s337_s8, %s21_s13  }
   0x8   : > { %p30_p4 = por %p29_p2, %p28_p1  ;;  %p35_p5 = scmp.eq.s32.totalorder %s222_s10, 0 }
   0x9   : > { %p244_p6 = scmp.lt.s32.totalorder %s341_s9, 2  ;;  %s84_s16 = sand.u32 1, %s337_s8  }
   0xa   : > { %p391_p7 = por %p35_p5, %p34_p3  ;;  %s226_s17 = sshll.u32 %s84_s16, 5 }
   0xb   : > { %s237_s18 = sshll.u32 %s341_s9, 9  ;;  %s88_s22 = scalar_lea.vmem [#allocation2], %s226_s17 }
   0xc   : > { %s459_s15 = scalar_select %p391_p7, 1, 0 }
   0xd   : > { %s400_s21 = scalar_lea.hbm %s456_s0, %s237_s18  ;;  %s96_s23 = sshll.u32 %s88_s22, 4  ;;  %s402_s23 = int_to_ptr.vmem [resolvable:$true] %s96_s23 }
   0xe   : > { %p404_p8 = pnand %p244_p6, %p30_p4  ;;  %s409_s25 = scalar_lea.sflag [#allocation3], %s84_s16 }
   0xf   : > { %s279_s26 = scalar_lea.hbm %s400_s21, 512  ;;  %s284_s29 = scalar_lea.hbm %s456_s0, 1024 }
  0x10   : > { %p280_p10 = scmp.ne.s32.totalorder %s400_s21, %s279_s26  ;;  %p281_p11 = pneg %p404_p8 }
  0x11   : > { %p285_p0 = scmp.lt.s32.totalorder %s400_s21, %s456_s0  ;;  %p286_p1 = scmp.lt.s32.totalorder %s284_s29, %s279_s26 }
  0x12   : > { %p282_p12 = pnand %p281_p11, %p280_p10 }
  0x13   : > { %p287_p2 = por %p286_p1, %p285_p0 }
  0x14   : > { %p283_p13 = pneg %p282_p12 }
  0x16   : > { %p288_p3 = pnand %p287_p2, %p283_p13 }
  0x18   : > { %291 = shalt.err (!%p288_p3)
}
  0x19   : > { %s292_s3 = scalar_lea.vmem %s402_s23, 512  ;;  %s343_s4 = smov [#allocation2]  }
  0x1a   : > { %p293_p4 = scmp.ne.s32.totalorder %s402_s23, %s292_s3  ;;  %s297_s5 = sshll.u32 %s343_s4, 4  ;;  %s298_s5 = int_to_ptr.vmem [resolvable:$false] %s297_s5 }
  0x1b   : > { %s299_s6 = scalar_lea.vmem %s298_s5, 1024  ;;  %p300_p10 = scmp.lt.s32.totalorder %s402_s23, %s298_s5 }
  0x1c   : > { %p295_p5 = pnand %p293_p4, %p281_p11  ;;  %p301_p12 = scmp.lt.s32.totalorder %s299_s6, %s292_s3 }
  0x1e   : > { %p296_p6 = pneg %p295_p5  ;;  %p302_p9 = por %p301_p12, %p300_p10 }
  0x20   : > { %p303_p7 = pnand %p302_p9, %p296_p6 }
  0x22   : > { %306 = shalt.err (!%p303_p7)
}
  0x23   : > { %s344_s12 = smov 256   ;;  %s345_s13 = smov 16  }
  0x24   : > { %243 = dma.hbm_to_vmem [thread:$0]  (!%p404_p8), %s400_s21, 512, %s402_s23, %s409_s25, %s344_s12, %s344_s12, %s345_s13  }
  0x25   : > { %p104_p11 = scmp.lt.s32.totalorder %s341_s9, 3  ;;  %p461_p13 = scmp.ge.s32.totalorder %s341_s9, 1 }
  0x27   : > { %p105_p0 = pnand %p461_p13, %p104_p11 }
  0x28   : > { %s110_s16 = sand.u32 (!%p105_p0), 1, %s333_s7   ;;  %p462_p7 = scmp.ne.s32.totalorder (!%p105_p0), %s459_s15, 0 }
  0x29   : > { %108 = sbr.rel (%p105_p0) target bundleno = 195 (0xc3), region = 24  ;;  %s231_s17 = sshll.u32 (!%p105_p0), %s110_s16, 5 }
  0x2a   : > { %s111_s18 = scalar_lea.sflag (!%p105_p0), [#allocation3], %s110_s16  ;;  %s114_s19 = scalar_lea.vmem (!%p105_p0), [#allocation2], %s231_s17 }
  0x2e   : > { %324 = dma.done.wait (%p462_p7), %s111_s18, 512  }
  0x2f   : > { %326 = vsyncadd (%p462_p7), %s111_s18, 4294966784  ;;  %v140_v0 = vld [vmem:[%s114_s19] sm:$0xff]  ;;  %v141_v1 = vld [vmem:[%s114_s19 + $0x8] sm:$0xff]  ;;  %s232_s20 = sshll.u32 %s222_s10, 1  ;;  %vm152_vm0 = vcmask 7168  }
  0x30   : > { %v142_v2 = vld [vmem:[%s114_s19 + $0x10] sm:$0xff]  ;;  %v144_v3 = vadd.f32 %v141_v1, %v140_v0  ;;  %v143_v4 = vld [vmem:[%s114_s19 + $0x18] sm:$0xff]  ;;  %p135_p8 = scmp.lt.s32.totalorder %s232_s20, 3 }
  0x31   : > { %v147_v5 = vadd.f32 %v143_v4, %v142_v2 }
  0x32   : > { %145 = vadd.xlane.f32.xlu0 %v144_v3  ;;  %s468_s20 = smov (!%p135_p8, %s232_s20), 3 }
  0x33   : > { %s233_s21 = sshll.u32 %s468_s20, 3 }
  0x34   : > { %s138_s24 = scalar_lea.vmem %s457_s1, %s233_s21 }
  0x36   : > { %148 = vadd.xlane.f32.xlu0 %v147_v5 }
  0xbb   : > { %v146_v6 = vpop.xlane.xlu0 %145 }
  0xbc   : > { %v150_v7 = vmul.f32 0.00390625, %v146_v6 }
  0xbe   : > { %153 = vst.msk [vmem:[%s138_s24] sm:$0xff] %vm152_vm0, %v150_v7 }
  0xbf   : > { %v149_v8 = vpop.xlane.xlu0 %148 }
  0xc0   : > { %v151_v9 = vmul.f32 0.00390625, %v149_v8 }
  0xc2   : > { %154 = vst.msk [vmem:[%s138_s24 + $0x8] sm:$0xff] %vm152_vm0, %v151_v9 }
  0xc3 PF: > { %p11_p9 = scmp.ge.s32.totalorder %s376_s11, 4   ;;  %s463_s6 = smov %s333_s7 }
  0xc4   : > { %s464_s7 = smov %s337_s8  ;;  %s465_s8 = smov %s386_s14 }
  0xc5   : > { %s466_s9 = smov %s376_s11  ;;  %13 = sbr.rel (!%p11_p9) target bundleno = 3 (0x3), region = 64 }
  0xca   :  { %177 = vsyncpa [#allocation3], 1 }
  0xcb   :  { %179 = vsyncpa [#allocation3 + $0x1], 1 }

</bundles_post_ra>
